<compile_context>
chip_gen: v5e
topology: v5e:2x2
jax: 0.10.0
libtpu: 0.0.40
codegen_flags: <defaults>
</compile_context>

<pallas_src>
from functools import partial

import jax
import jax.numpy as jnp
from jax.experimental import pallas as pl
from jax.experimental.pallas import tpu as pltpu


# ----------------------------- fused fast path ----------------------------- #

def _s2c_kernel(x_ref, p_ref, o_ref, *, reps, width, lchunk):
    """Fused group-mean + 2x2 pixel-unshuffle.

    x_ref: (1, reps, c_t, h_t2, 2*width)   input-view block ([even row | odd row] lanes)
    p_ref: (lchunk, lchunk)                constant 0/1 even/odd deinterleave matrix
    o_ref: (1, c_t, 4, h_t2, width // 2)   output block; dim 2 indexes 2*di + dj
    """
    half = lchunk // 2
    nwc = width // lchunk            # lane chunks per row parity
    inv = 1.0 / reps
    p = p_ref[...]
    c_t = o_ref.shape[1]

    for c in range(c_t):
        # Mean over the `reps` channel groups, accumulated in f32.
        acc = x_ref[0, 0, c].astype(jnp.float32)
        for r in range(1, reps):
            acc = acc + x_ref[0, r, c].astype(jnp.float32)
        acc = acc * inv              # (h_t2, 2*width)

        for wi in range(2 * nwc):
            di = wi // nwc                       # row parity of this lane chunk
            xo = (wi % nwc) * half               # output column offset
            chunk = acc[:, wi * lchunk:(wi + 1) * lchunk]        # (h_t2, lchunk)
            # Even/odd column deinterleave on the idle MXU: res[:, :half] are the
            # dj=0 columns, res[:, half:] the dj=1 columns, both lane-contiguous.
            res = jnp.dot(chunk, p,
                          preferred_element_type=jnp.float32,
                          precision=jax.lax.Precision.HIGHEST)
            o_ref[0, c, 2 * di, :, pl.ds(xo, half)] = (
                res[:, :half].astype(o_ref.dtype))
            o_ref[0, c, 2 * di + 1, :, pl.ds(xo, half)] = (
                res[:, half:].astype(o_ref.dtype))


def _pick_lane_chunk(w):
    """Largest even divisor of w that is <= 256 (bounds MXU permute cost); else w."""
    if w <= 256:
        return w
    for cand in range(256, 63, -2):
        if w % cand == 0:
            return cand
    return w  # rare awkward widths: permute at full row width


def _build_perm(lchunk):
    """(lchunk, lchunk) 0/1 matrix: cols [0, L/2) select even lanes, [L/2, L) odd."""
    half = lchunk // 2
    u = jnp.arange(lchunk)[:, None]
    k = jnp.arange(lchunk)[None, :]
    even = (u == 2 * k)
    odd = (u == 2 * (k - half) + 1)
    return jnp.where(k < half, even, odd).astype(jnp.float32)


def _fused_space_to_channel(x, reps, target_bytes=4 << 20):
    b, c, h, w = x.shape
    cg = c // reps
    h2, w2 = h // 2, w // 2
    lanes = 2 * w
    itemsize = jnp.dtype(x.dtype).itemsize

    lchunk = _pick_lane_chunk(w)
    nwc = max(1, w // lchunk)

    # Tile sizing: ~target_bytes of input per grid step; h tiled in multiples of 8
    # (cdiv grid, partial edge blocks OK), then channels-of-the-averaged-output (cg).
    row_bytes = lanes * itemsize
    rows = max(1, target_bytes // row_bytes)            # rows per block (reps*c_t*h_t2)
    h_t2 = max(1, min(h2, rows // reps))
    if h2 >= 8:
        h_t2 = max(8, (h_t2 // 8) * 8)
    c_t = max(1, min(cg, rows // (reps * h_t2)))
    c_t = min(c_t, max(1, 64 // (2 * nwc)))             # cap unrolled loop length

    # v7x megacore: prefer >= 2 grid steps so both TensorCores get work.
    if b == 1 and pl.cdiv(cg, c_t) * pl.cdiv(h2, h_t2) < 2:
        if c_t > 1:
            c_t = (c_t + 1) // 2
        elif h_t2 >= 16:
            h_t2 = max(8, ((h_t2 // 2) // 8) * 8)

    grid = (b, pl.cdiv(cg, c_t), pl.cdiv(h2, h_t2))

    # Free views: split channels into (reps, cg) groups and fold row pairs into the
    # lane dim; the output layout below reshapes for free to (b, 4*cg, h2, w2).
    xv = x.reshape(b, reps, cg, h2, lanes)
    perm = _build_perm(lchunk)

    in_block = reps * c_t * h_t2 * lanes * itemsize
    out_block = c_t * 4 * h_t2 * w2 * itemsize
    acc_bytes = h_t2 * lanes * 4
    vmem = 2 * in_block + 2 * out_block + acc_bytes + 2 * lchunk * lchunk * 4 + (4 << 20)
    vmem_limit = int(min(max(vmem, 32 << 20), 48 << 20))

    out5 = pl.pallas_call(
        partial(_s2c_kernel, reps=reps, width=w, lchunk=lchunk),
        out_shape=jax.ShapeDtypeStruct((b, cg, 4, h2, w2), x.dtype),
        grid_spec=pltpu.PrefetchScalarGridSpec(
            num_scalar_prefetch=0,
            grid=grid,
            in_specs=[
                pl.BlockSpec((1, reps, c_t, h_t2, lanes),
                             lambda bi, ci, hi: (bi, 0, ci, hi, 0)),
                pl.BlockSpec((lchunk, lchunk), lambda bi, ci, hi: (0, 0)),
            ],
            out_specs=pl.BlockSpec((1, c_t, 4, h_t2, w2),
                                   lambda bi, ci, hi: (bi, ci, 0, hi, 0)),
        ),
        compiler_params=pltpu.CompilerParams(
            dimension_semantics=("parallel", "parallel", "parallel"),
            vmem_limit_bytes=vmem_limit,
        ),
    )(xv, perm)
    return out5.reshape(b, 4 * cg, h2, w2)


# --------------------------- fallback (C % reps != 0) --------------------------- #

def _group_mean_kernel(x_ref, o_ref, *, reps):
    cg = o_ref.shape[1]
    acc = x_ref[0, 0:cg, :].astype(jnp.float32)
    for r in range(1, reps):
        acc = acc + x_ref[0, r * cg:(r + 1) * cg, :].astype(jnp.float32)
    o_ref[0, :, :] = (acc * (1.0 / reps)).astype(o_ref.dtype)


def _group_channel_mean(x3, reps, target_bytes=4 << 20):
    """x3: (B, C_total, L) -> (B, C_total // reps, L); mean over contiguous groups."""
    b, c_total, l = x3.shape
    assert c_total % reps == 0
    cg = c_total // reps
    itemsize = jnp.dtype(x3.dtype).itemsize

    t = max(128, (target_bytes // max(1, c_total * itemsize)) // 128 * 128)
    if t >= l:
        t = l                                   # single (possibly unaligned) full block
    grid = (b, pl.cdiv(l, t))

    vmem = 2 * c_total * t * itemsize + 2 * cg * t * itemsize + cg * t * 4 + (4 << 20)
    vmem_limit = int(min(max(vmem, 32 << 20), 48 << 20))

    return pl.pallas_call(
        partial(_group_mean_kernel, reps=reps),
        out_shape=jax.ShapeDtypeStruct((b, cg, l), x3.dtype),
        grid_spec=pltpu.PrefetchScalarGridSpec(
            num_scalar_prefetch=0,
            grid=grid,
            in_specs=[pl.BlockSpec((1, c_total, t), lambda i, j: (i, 0, j))],
            out_specs=pl.BlockSpec((1, cg, t), lambda i, j: (i, 0, j)),
        ),
        compiler_params=pltpu.CompilerParams(
            dimension_semantics=("parallel", "parallel"),
            vmem_limit_bytes=vmem_limit,
        ),
    )(x3)


# --------------------------------- wrapper --------------------------------- #

def space_to_channel(x, ch_in, ch_out):
    """Pallas implementation of SpaceToChannel.forward. x is NCHW."""
    reps = 4 if ch_in == ch_out else 2
    b, c, h, w = x.shape
    assert c == ch_in, f"expected {ch_in} input channels, got {c}"
    assert h % 2 == 0 and w % 2 == 0
    h2, w2 = h // 2, w // 2

    if c % reps == 0:
        # Fully fused: one HBM read of x, one HBM write of the reps-x smaller output.
        return _fused_space_to_channel(x, reps)

    # General fallback: XLA pixel_unshuffle, then Pallas grouped-channel mean.
    xu = x.reshape(b, c, h2, 2, w2, 2)
    xu = jnp.transpose(xu, (0, 1, 3, 5, 2, 4)).reshape(b, 4 * c, h2 * w2)
    out = _group_channel_mean(xu, reps)
    return out.reshape(b, (4 * c) // reps, h2, w2)


def _reference_space_to_channel(x, ch_in, ch_out):
    """Pure-JAX reference mirroring the PyTorch forward exactly."""
    reps = 4 if ch_in == ch_out else 2
    b, c, h, w = x.shape
    h2, w2 = h // 2, w // 2
    xu = x.reshape(b, c, h2, 2, w2, 2)
    xu = jnp.transpose(xu, (0, 1, 3, 5, 2, 4)).reshape(b, c * 4, h2, w2)
    return xu.reshape(b, reps, (c * 4) // reps, h2, w2).mean(axis=1)


if __name__ == "__main__":
    key = jax.random.PRNGKey(0)
    x = jax.random.normal(key, (2, 4, 16, 16), dtype=jnp.float32)

    s2c = jax.jit(space_to_channel, static_argnames=("ch_in", "ch_out"))

    # Case 1: ch_in != ch_out  -> reps = 2  -> output (2, 8, 8, 8)
    out_a = jax.block_until_ready(s2c(x, ch_in=4, ch_out=8))
    ref_a = _reference_space_to_channel(x, 4, 8)
    assert out_a.shape == (2, 8, 8, 8)
    assert jnp.allclose(out_a, ref_a, atol=1e-5, rtol=1e-5)

    # Case 2: ch_in == ch_out  -> reps = 4  -> output (2, 4, 8, 8)
    out_b = jax.block_until_ready(s2c(x, ch_in=4, ch_out=4))
    ref_b = _reference_space_to_channel(x, 4, 4)
    assert out_b.shape == (2, 4, 8, 8)
    assert jnp.allclose(out_b, ref_b, atol=1e-5, rtol=1e-5)

    # Case 3: general fallback path (C not divisible by reps): ch_in=3 -> reps=2
    x3 = jax.random.normal(jax.random.PRNGKey(1), (2, 3, 16, 16), dtype=jnp.float32)
    out_c = jax.block_until_ready(s2c(x3, ch_in=3, ch_out=6))
    ref_c = _reference_space_to_channel(x3, 3, 6)
    assert out_c.shape == (2, 6, 8, 8)
    assert jnp.allclose(out_c, ref_c, atol=1e-5, rtol=1e-5)

    print("KERNEL_OK")
</pallas_src>

<mosaic_0001>
module attributes {stable_mosaic.version = 11 : i64} {
  func.func @_s2c_kernel(%arg0: i32, %arg1: i32, %arg2: i32, %arg3: memref<1x2x2x8x32xf32, #tpu.memory_space<vmem>>, %arg4: memref<16x16xf32, #tpu.memory_space<vmem>>, %arg5: memref<1x2x4x8x8xf32, #tpu.memory_space<vmem>>) attributes {dimension_semantics = [#tpu.dimension_semantics<parallel>, #tpu.dimension_semantics<parallel>, #tpu.dimension_semantics<parallel>], iteration_bounds = array<i64: 2, 1, 1>, scalar_prefetch = 0 : i64, scratch_operands = 0 : i64, tpu.core_type = #tpu.core_type<tc>, window_params = [{transform_indices = @transform_0, window_bounds = array<i64: 1, 2, 2, 8, 32>}, {pipeline_mode = #tpu.pipeline_mode<synchronous>, transform_indices = @transform_1, window_bounds = array<i64: 16, 16>}, {transform_indices = @transform_2, window_bounds = array<i64: 1, 2, 4, 8, 8>}]} {
    %c0 = arith.constant 0 : index
    %c0_0 = arith.constant 0 : index
    %0 = vector.load %arg4[%c0, %c0_0] : memref<16x16xf32, #tpu.memory_space<vmem>>, vector<16x16xf32>
    %c0_1 = arith.constant 0 : index
    %c0_2 = arith.constant 0 : index
    %c0_3 = arith.constant 0 : index
    %c0_4 = arith.constant 0 : index
    %c0_5 = arith.constant 0 : index
    %1 = vector.load %arg3[%c0_1, %c0_2, %c0_3, %c0_4, %c0_5] : memref<1x2x2x8x32xf32, #tpu.memory_space<vmem>>, vector<1x1x1x8x32xf32>
    %2 = vector.shape_cast %1 : vector<1x1x1x8x32xf32> to vector<8x32xf32>
    %c0_6 = arith.constant 0 : index
    %c1 = arith.constant 1 : index
    %c0_7 = arith.constant 0 : index
    %c0_8 = arith.constant 0 : index
    %c0_9 = arith.constant 0 : index
    %3 = vector.load %arg3[%c0_6, %c1, %c0_7, %c0_8, %c0_9] : memref<1x2x2x8x32xf32, #tpu.memory_space<vmem>>, vector<1x1x1x8x32xf32>
    %4 = vector.shape_cast %3 : vector<1x1x1x8x32xf32> to vector<8x32xf32>
    %5 = arith.addf %2, %4 : vector<8x32xf32>
    %cst = arith.constant 5.000000e-01 : f32
    %6 = vector.broadcast %cst : f32 to vector<8x32xf32>
    %7 = arith.mulf %5, %6 : vector<8x32xf32>
    %8 = vector.extract_strided_slice %7 {offsets = [0, 0], sizes = [8, 16], strides = [1, 1]} : vector<8x32xf32> to vector<8x16xf32>
    %cst_10 = arith.constant dense<0.000000e+00> : vector<8x16xf32>
    %9 = tpu.matmul %8, %0, %cst_10 {dimension_numbers = #tpu.dot_dimension_numbers<[1], [0], [0], [1], [0, 0, 1, 1], [], []>, precision = #tpu.contract_precision<fp32>} : vector<8x16xf32>, vector<16x16xf32>, vector<8x16xf32> -> vector<8x16xf32>
    %10 = vector.extract_strided_slice %9 {offsets = [0, 0], sizes = [8, 8], strides = [1, 1]} : vector<8x16xf32> to vector<8x8xf32>
    %c0_11 = arith.constant 0 : index
    %c0_12 = arith.constant 0 : index
    %c0_13 = arith.constant 0 : index
    %c0_14 = arith.constant 0 : index
    %c0_15 = arith.constant 0 : index
    %11 = vector.load %arg5[%c0_11, %c0_12, %c0_13, %c0_14, %c0_15] : memref<1x2x4x8x8xf32, #tpu.memory_space<vmem>>, vector<1x1x1x8x8xf32>
    %12 = vector.shape_cast %11 : vector<1x1x1x8x8xf32> to vector<8x8xf32>
    %13 = vector.shape_cast %10 : vector<8x8xf32> to vector<1x1x1x8x8xf32>
    tpu.vector_store %arg5[%c0_11, %c0_12, %c0_13, %c0_14, %c0_15], %13 {strides = array<i32>} : memref<1x2x4x8x8xf32, #tpu.memory_space<vmem>>, vector<1x1x1x8x8xf32>,
    %14 = vector.extract_strided_slice %9 {offsets = [0, 8], sizes = [8, 8], strides = [1, 1]} : vector<8x16xf32> to vector<8x8xf32>
    %c0_16 = arith.constant 0 : index
    %c0_17 = arith.constant 0 : index
    %c1_18 = arith.constant 1 : index
    %c0_19 = arith.constant 0 : index
    %c0_20 = arith.constant 0 : index
    %15 = vector.load %arg5[%c0_16, %c0_17, %c1_18, %c0_19, %c0_20] : memref<1x2x4x8x8xf32, #tpu.memory_space<vmem>>, vector<1x1x1x8x8xf32>
    %16 = vector.shape_cast %15 : vector<1x1x1x8x8xf32> to vector<8x8xf32>
    %17 = vector.shape_cast %14 : vector<8x8xf32> to vector<1x1x1x8x8xf32>
    tpu.vector_store %arg5[%c0_16, %c0_17, %c1_18, %c0_19, %c0_20], %17 {strides = array<i32>} : memref<1x2x4x8x8xf32, #tpu.memory_space<vmem>>, vector<1x1x1x8x8xf32>,
    %18 = vector.extract_strided_slice %7 {offsets = [0, 16], sizes = [8, 16], strides = [1, 1]} : vector<8x32xf32> to vector<8x16xf32>
    %cst_21 = arith.constant dense<0.000000e+00> : vector<8x16xf32>
    %19 = tpu.matmul %18, %0, %cst_21 {dimension_numbers = #tpu.dot_dimension_numbers<[1], [0], [0], [1], [0, 0, 1, 1], [], []>, precision = #tpu.contract_precision<fp32>} : vector<8x16xf32>, vector<16x16xf32>, vector<8x16xf32> -> vector<8x16xf32>
    %20 = vector.extract_strided_slice %19 {offsets = [0, 0], sizes = [8, 8], strides = [1, 1]} : vector<8x16xf32> to vector<8x8xf32>
    %c0_22 = arith.constant 0 : index
    %c0_23 = arith.constant 0 : index
    %c2 = arith.constant 2 : index
    %c0_24 = arith.constant 0 : index
    %c0_25 = arith.constant 0 : index
    %21 = vector.load %arg5[%c0_22, %c0_23, %c2, %c0_24, %c0_25] : memref<1x2x4x8x8xf32, #tpu.memory_space<vmem>>, vector<1x1x1x8x8xf32>
    %22 = vector.shape_cast %21 : vector<1x1x1x8x8xf32> to vector<8x8xf32>
    %23 = vector.shape_cast %20 : vector<8x8xf32> to vector<1x1x1x8x8xf32>
    tpu.vector_store %arg5[%c0_22, %c0_23, %c2, %c0_24, %c0_25], %23 {strides = array<i32>} : memref<1x2x4x8x8xf32, #tpu.memory_space<vmem>>, vector<1x1x1x8x8xf32>,
    %24 = vector.extract_strided_slice %19 {offsets = [0, 8], sizes = [8, 8], strides = [1, 1]} : vector<8x16xf32> to vector<8x8xf32>
    %c0_26 = arith.constant 0 : index
    %c0_27 = arith.constant 0 : index
    %c3 = arith.constant 3 : index
    %c0_28 = arith.constant 0 : index
    %c0_29 = arith.constant 0 : index
    %25 = vector.load %arg5[%c0_26, %c0_27, %c3, %c0_28, %c0_29] : memref<1x2x4x8x8xf32, #tpu.memory_space<vmem>>, vector<1x1x1x8x8xf32>
    %26 = vector.shape_cast %25 : vector<1x1x1x8x8xf32> to vector<8x8xf32>
    %27 = vector.shape_cast %24 : vector<8x8xf32> to vector<1x1x1x8x8xf32>
    tpu.vector_store %arg5[%c0_26, %c0_27, %c3, %c0_28, %c0_29], %27 {strides = array<i32>} : memref<1x2x4x8x8xf32, #tpu.memory_space<vmem>>, vector<1x1x1x8x8xf32>,
    %c0_30 = arith.constant 0 : index
    %c0_31 = arith.constant 0 : index
    %c1_32 = arith.constant 1 : index
    %c0_33 = arith.constant 0 : index
    %c0_34 = arith.constant 0 : index
    %28 = vector.load %arg3[%c0_30, %c0_31, %c1_32, %c0_33, %c0_34] : memref<1x2x2x8x32xf32, #tpu.memory_space<vmem>>, vector<1x1x1x8x32xf32>
    %29 = vector.shape_cast %28 : vector<1x1x1x8x32xf32> to vector<8x32xf32>
    %c0_35 = arith.constant 0 : index
    %c1_36 = arith.constant 1 : index
    %c1_37 = arith.constant 1 : index
    %c0_38 = arith.constant 0 : index
    %c0_39 = arith.constant 0 : index
    %30 = vector.load %arg3[%c0_35, %c1_36, %c1_37, %c0_38, %c0_39] : memref<1x2x2x8x32xf32, #tpu.memory_space<vmem>>, vector<1x1x1x8x32xf32>
    %31 = vector.shape_cast %30 : vector<1x1x1x8x32xf32> to vector<8x32xf32>
    %32 = arith.addf %29, %31 : vector<8x32xf32>
    %cst_40 = arith.constant 5.000000e-01 : f32
    %33 = vector.broadcast %cst_40 : f32 to vector<8x32xf32>
    %34 = arith.mulf %32, %33 : vector<8x32xf32>
    %35 = vector.extract_strided_slice %34 {offsets = [0, 0], sizes = [8, 16], strides = [1, 1]} : vector<8x32xf32> to vector<8x16xf32>
    %cst_41 = arith.constant dense<0.000000e+00> : vector<8x16xf32>
    %36 = tpu.matmul %35, %0, %cst_41 {dimension_numbers = #tpu.dot_dimension_numbers<[1], [0], [0], [1], [0, 0, 1, 1], [], []>, precision = #tpu.contract_precision<fp32>} : vector<8x16xf32>, vector<16x16xf32>, vector<8x16xf32> -> vector<8x16xf32>
    %37 = vector.extract_strided_slice %36 {offsets = [0, 0], sizes = [8, 8], strides = [1, 1]} : vector<8x16xf32> to vector<8x8xf32>
    %c0_42 = arith.constant 0 : index
    %c1_43 = arith.constant 1 : index
    %c0_44 = arith.constant 0 : index
    %c0_45 = arith.constant 0 : index
    %c0_46 = arith.constant 0 : index
    %38 = vector.load %arg5[%c0_42, %c1_43, %c0_44, %c0_45, %c0_46] : memref<1x2x4x8x8xf32, #tpu.memory_space<vmem>>, vector<1x1x1x8x8xf32>
    %39 = vector.shape_cast %38 : vector<1x1x1x8x8xf32> to vector<8x8xf32>
    %40 = vector.shape_cast %37 : vector<8x8xf32> to vector<1x1x1x8x8xf32>
    tpu.vector_store %arg5[%c0_42, %c1_43, %c0_44, %c0_45, %c0_46], %40 {strides = array<i32>} : memref<1x2x4x8x8xf32, #tpu.memory_space<vmem>>, vector<1x1x1x8x8xf32>,
    %41 = vector.extract_strided_slice %36 {offsets = [0, 8], sizes = [8, 8], strides = [1, 1]} : vector<8x16xf32> to vector<8x8xf32>
    %c0_47 = arith.constant 0 : index
    %c1_48 = arith.constant 1 : index
    %c1_49 = arith.constant 1 : index
    %c0_50 = arith.constant 0 : index
    %c0_51 = arith.constant 0 : index
    %42 = vector.load %arg5[%c0_47, %c1_48, %c1_49, %c0_50, %c0_51] : memref<1x2x4x8x8xf32, #tpu.memory_space<vmem>>, vector<1x1x1x8x8xf32>
    %43 = vector.shape_cast %42 : vector<1x1x1x8x8xf32> to vector<8x8xf32>
    %44 = vector.shape_cast %41 : vector<8x8xf32> to vector<1x1x1x8x8xf32>
    tpu.vector_store %arg5[%c0_47, %c1_48, %c1_49, %c0_50, %c0_51], %44 {strides = array<i32>} : memref<1x2x4x8x8xf32, #tpu.memory_space<vmem>>, vector<1x1x1x8x8xf32>,
    %45 = vector.extract_strided_slice %34 {offsets = [0, 16], sizes = [8, 16], strides = [1, 1]} : vector<8x32xf32> to vector<8x16xf32>
    %cst_52 = arith.constant dense<0.000000e+00> : vector<8x16xf32>
    %46 = tpu.matmul %45, %0, %cst_52 {dimension_numbers = #tpu.dot_dimension_numbers<[1], [0], [0], [1], [0, 0, 1, 1], [], []>, precision = #tpu.contract_precision<fp32>} : vector<8x16xf32>, vector<16x16xf32>, vector<8x16xf32> -> vector<8x16xf32>
    %47 = vector.extract_strided_slice %46 {offsets = [0, 0], sizes = [8, 8], strides = [1, 1]} : vector<8x16xf32> to vector<8x8xf32>
    %c0_53 = arith.constant 0 : index
    %c1_54 = arith.constant 1 : index
    %c2_55 = arith.constant 2 : index
    %c0_56 = arith.constant 0 : index
    %c0_57 = arith.constant 0 : index
    %48 = vector.load %arg5[%c0_53, %c1_54, %c2_55, %c0_56, %c0_57] : memref<1x2x4x8x8xf32, #tpu.memory_space<vmem>>, vector<1x1x1x8x8xf32>
    %49 = vector.shape_cast %48 : vector<1x1x1x8x8xf32> to vector<8x8xf32>
    %50 = vector.shape_cast %47 : vector<8x8xf32> to vector<1x1x1x8x8xf32>
    tpu.vector_store %arg5[%c0_53, %c1_54, %c2_55, %c0_56, %c0_57], %50 {strides = array<i32>} : memref<1x2x4x8x8xf32, #tpu.memory_space<vmem>>, vector<1x1x1x8x8xf32>,
    %51 = vector.extract_strided_slice %46 {offsets = [0, 8], sizes = [8, 8], strides = [1, 1]} : vector<8x16xf32> to vector<8x8xf32>
    %c0_58 = arith.constant 0 : index
    %c1_59 = arith.constant 1 : index
    %c3_60 = arith.constant 3 : index
    %c0_61 = arith.constant 0 : index
    %c0_62 = arith.constant 0 : index
    %52 = vector.load %arg5[%c0_58, %c1_59, %c3_60, %c0_61, %c0_62] : memref<1x2x4x8x8xf32, #tpu.memory_space<vmem>>, vector<1x1x1x8x8xf32>
    %53 = vector.shape_cast %52 : vector<1x1x1x8x8xf32> to vector<8x8xf32>
    %54 = vector.shape_cast %51 : vector<8x8xf32> to vector<1x1x1x8x8xf32>
    tpu.vector_store %arg5[%c0_58, %c1_59, %c3_60, %c0_61, %c0_62], %54 {strides = array<i32>} : memref<1x2x4x8x8xf32, #tpu.memory_space<vmem>>, vector<1x1x1x8x8xf32>,
    return
  }
  func.func @transform_0(%arg0: i32, %arg1: i32, %arg2: i32) -> (i32, i32, i32, i32, i32) {
    %c0_i32 = arith.constant 0 : i32
    %c0_i32_0 = arith.constant 0 : i32
    %c0_i32_1 = arith.constant 0 : i32
    return %arg0, %c0_i32, %arg1, %arg2, %c0_i32_0 : i32, i32, i32, i32, i32
  }
  func.func @transform_1(%arg0: i32, %arg1: i32, %arg2: i32) -> (i32, i32) {
    %c0_i32 = arith.constant 0 : i32
    %c0_i32_0 = arith.constant 0 : i32
    %c0_i32_1 = arith.constant 0 : i32
    return %c0_i32, %c0_i32_0 : i32, i32
  }
  func.func @transform_2(%arg0: i32, %arg1: i32, %arg2: i32) -> (i32, i32, i32, i32, i32) {
    %c0_i32 = arith.constant 0 : i32
    %c0_i32_0 = arith.constant 0 : i32
    %c0_i32_1 = arith.constant 0 : i32
    return %arg0, %arg1, %c0_i32, %arg2, %c0_i32_0 : i32, i32, i32, i32, i32
  }
}

</mosaic_0001>

<bundles_post_ra>
// kernel: space_to_channel.1
= control target key start
LH: loop header
LB: loop body
LE: loop exit
PB: predicated region body
PF: predicated region fallthrough
CT: control target
= control target key end

     0   :  { %7 = vsyncpa [#allocation3], 0  ;;  %s1384_s0 = inlined_call_operand.vmem [shape: f32[2,2,2,8,32], index: 0, kind: input, shape index: {}]   ;;  %s1385_s1 = inlined_call_operand.vmem [shape: f32[16,16], index: 1, kind: input, shape index: {}]   ;;  %s1386_s2 = inlined_call_operand.hbm [shape: f32[2,2,4,8,8], index: 2, kind: output, shape index: {}]  }
   0x1   :  { %9 = vsyncpa [#allocation3 + $0x1], 0  ;;  %s1178_s9 = smov 0   ;;  %s1180_s10 = smov 0  }
   0x2   :  { %s1182_s11 = smov 0   ;;  %s1184_s12 = smov 0  }
   0x3   :  { %s1186_s13 = smov 0   ;;  %s1188_s14 = smov 0  }
   0x4 LB: > { %s995_s15 = sadd.s32 4294967295, %s1157_s14   ;;  %s996_s16 = sadd.s32 4294967294, %s1157_s14   ;;  %s1157_s14 = sphi %s1188_s14, %s15_s14   ;;  %s1153_s13 = sphi %s1186_s13, %s1393_s13   ;;  %s1149_s12 = sphi %s1184_s12, %s1392_s12   ;;  %s1145_s11 = sphi %s1182_s11, %s1391_s11   ;;  %s1141_s10 = sphi %s1180_s10, %s1390_s10   ;;  %s1137_s9 = sphi %s1178_s9, %s1389_s9  }
   0x5   : > { %s34_s17 = sadd.s32 1, %s1153_s13  ;;  %s96_s18 = sadd.s32 1, %s1145_s11 }
   0x6   : > { %p36_p0 = scmp.ge.s32.totalorder %s34_s17, 2  ;;  %p106_p1 = scmp.ne.s32.totalorder %s1145_s11, %s1141_s10 }
   0x7   : > { %p107_p2 = scmp.eq.s32.totalorder %s995_s15, 1  ;;  %p112_p3 = scmp.ne.s32.totalorder %s1141_s10, %s1137_s9 }
   0x8   : > { %s1395_s17 = smov (%p36_p0, %s34_s17), 0  ;;  %p113_p5 = scmp.eq.s32.totalorder %s996_s16, 1 }
   0x9   : > { %p1218_p4 = por %p107_p2, %p106_p1  ;;  %s89_s20 = ssub.s32 %s1153_s13, %s1395_s17 }
   0xa   : > { %p999_p6 = scmp.ge.s32.totalorder %s1157_s14, 1  ;;  %p94_p7 = scmp.eq.s32.totalorder %s89_s20, 0 }
   0xb   : > { %p1225_p8 = por %p113_p5, %p112_p3  ;;  %p150_p9 = scmp.lt.s32.totalorder %s1157_s14, 3 }
   0xc   : > { %s1231_s22 = scalar_select %p94_p7, %s1145_s11, %s96_s18  }
   0xd   : > { %p151_p10 = pnand %p999_p6, %p150_p9 }
   0xe   : > { %p180_p11 = scmp.lt.s32.totalorder (!%p151_p10), %s1149_s12, 1  ;;  %s1159_s4 = smov (!%p151_p10), 112  }
   0xf   : > { %154 = sbr.rel (%p151_p10) target bundleno = 419 (0x1a3), region = 28  ;;  %s176_s5 = sand.u32 (!%p151_p10), 1, %s1141_s10  }
  0x10   : > { %s1000_s6 = sshll.u32 (!%p151_p10), %s176_s5, 6  ;;  %s1160_s7 = smov (!%p151_p10), 120  }
  0x11   : > { %s1324_s8 = scalar_lea.vmem (!%p151_p10), [#allocation2], %s1000_s6  ;;  %s1019_s15 = sshll.u32 (!%p151_p10), %s1149_s12, 6 }
  0x12   : > { %s905_s20 = scalar_lea.hbm (!%p151_p10), %s1386_s2, %s1019_s15  ;;  %s906_s23 = sshll.u32 (!%p151_p10), %s1324_s8, 4  ;;  %s907_s23 = int_to_ptr.vmem [resolvable:$true] %s906_s23 }
  0x13   : > { %s908_s24 = sshll.u32 (!%p151_p10), %s905_s20, 4  ;;  %s890_s25 = scalar_lea.sflag (!%p151_p10), [#allocation3], %s176_s5  ;;  %s909_s24 = int_to_ptr.hbm [resolvable:$true] %s908_s24 }
  0x14   : > { %v194_v0 = vld [vmem:[%s1385_s1 + $0x8] sm:$0xff]  ;;  %v193_v1 = vld [vmem:[%s1385_s1] sm:$0xff]  ;;  %s181_s27 = scalar_select %p180_p11, %s1149_s12, 1  ;;  %vm200_vm0 = vcmask 130048   ;;  %vm363_vm1 = vcmask 64512  }
  0x15   : > { %v1240_v2 = vand.u32 4294901760, %v194_v0  ;;  %v1242_v3 = vand.u32 4294901760, %v193_v1  ;;  %s1093_s26 = sshra.s32 %s909_s24, 4  ;;  %s1099_s29 = scalar_lea.hbm %s1386_s2, 128  ;;  %s1094_s26 = int_to_ptr.hbm [resolvable:$true] %s1093_s26 }
  0x16   : > { %s1018_s28 = sshll.u32 %s181_s27, 5  ;;  %s1095_s27 = scalar_lea.hbm %s1094_s26, 64 }
  0x17   : > { %219 = vmatpush.msra.mxu0 %v1240_v2  ;;  %v1247_v4 = vsub.f32 %v194_v0, %v1240_v2  ;;  %v1250_v5 = vsub.f32 %v193_v1, %v1242_v3  ;;  %303 = vmatpush.msra.mxu3 %v1240_v2  ;;  %s190_s3 = scalar_lea.vmem %s1384_s0, %s1018_s28  ;;  %p1096_p12 = scmp.ne.s32.totalorder %s1094_s26, %s1095_s27 }
  0x18   : > { %v195_v8 = vld [vmem:[%s190_s3] sm:$0xff]  ;;  %v1003_v9 = vld [vmem:[%s190_s3 + $0x10] sm:$0xff]  ;;  %v1007_v13 = vld [vmem:[%s190_s3 + $0x8] sm:$0xff]  ;;  %p1100_p1 = scmp.lt.s32.totalorder %s1094_s26, %s1386_s2  ;;  %p1101_p2 = scmp.lt.s32.totalorder %s1099_s29, %s1095_s27 }
  0x19   : > { %221 = vmatpush.msra.mxu0 %v1242_v3  ;;  %v1258_v6 = vand.u32 4294901760, %v1247_v4  ;;  %v1261_v7 = vand.u32 4294901760, %v1250_v5  ;;  %305 = vmatpush.msra.mxu3 %v1242_v3  ;;  %v198_v10 = vadd.f32 %v1003_v9, %v195_v8  ;;  %v1008_v14 = vld [vmem:[%s190_s3 + $0x18] sm:$0xff]  ;;  %p1097_p13 = pnand %p1096_p12, %p1218_p4 }
  0x1a   : > { %278 = vmatpush.msra.mxu2 %v1247_v4  ;;  %v546_v19 = vadd.f32 %v1008_v14, %v1007_v13  ;;  %p1102_p3 = por %p1101_p2, %p1100_p1 }
  0x1b   : > { %v248_v11 = vsub.f32 %v1247_v4, %v1258_v6  ;;  %v254_v12 = vsub.f32 %v1250_v5, %v1261_v7  ;;  %330 = vmatpush.msrb.mxu0 %v1258_v6  ;;  %v199_v15 = vmul.f32 0.5, %v198_v10  ;;  %p1098_p0 = pneg %p1097_p13 }
  0x1c   : > { %281 = vmatpush.msra.mxu2 %v1250_v5  ;;  %v547_v22 = vmul.f32 0.5, %v546_v19 }
  0x1d   : > { %v1271_v16 = vand.u32 4294901760, %v248_v11  ;;  %v1273_v17 = vand.u32 4294901760, %v254_v12  ;;  %334 = vmatpush.msrb.mxu0 %v1261_v7  ;;  %371 = vrot.lane.b32.xlu0 %v199_v15, %s1159_s4  ;;  %v202_v18 = vsel %vm200_vm0, %v199_v15, 0  ;;  %p1103_p5 = pnand %p1102_p3, %p1098_p0 }
  0x1e   : > { %390 = vmatpush.msrb.mxu2 %v1240_v2  ;;  %v222_v20 = vand.u32 4294901760, %v202_v18  ;;  %v549_v26 = vsel %vm200_vm0, %v547_v22, 0 }
  0x1f   : > { %250 = vmatpush.msra.mxu1 %v1271_v16  ;;  %421 = vmatpush.msrb.mxu3 %v1271_v16  ;;  %v569_v27 = vand.u32 4294901760, %v549_v26 }
  0x20   : > { %392 = vmatpush.msrb.mxu2 %v1242_v3  ;;  %v223_v21 = vsub.f32 %v202_v18, %v222_v20 }
  0x21   : > { %256 = vmatpush.msra.mxu1 %v1273_v17  ;;  %427 = vmatpush.msrb.mxu3 %v1273_v17  ;;  %v570_v28 = vsub.f32 %v549_v26, %v569_v27 }
  0x22   : > { %258 = vmatmul.f32.vlgmr.msra.gmra.mxu1 %v222_v20  ;;  %v224_v23 = vand.u32 4294901760, %v223_v21  ;;  %284 = vmatmul.f32.vlgmr.msra.gmra.mxu2 %v223_v21 }
  0x23   : > { %355 = vmatpush.msrb.mxu1 %v1240_v2  ;;  %501 = vmatpush.msra.mxu2 %v1258_v6  ;;  %v571_v32 = vand.u32 4294901760, %v570_v28 }
  0x24   : > { %v225_v24 = vsub.f32 %v223_v21, %v224_v23  ;;  %309 = vmatmul.f32.vlgmr.msra.gmra.mxu3 %v224_v23 }
  0x25   : > { %357 = vmatpush.msrb.mxu1 %v1242_v3  ;;  %718 = vrot.lane.b32.xlu0 %v547_v22, %s1159_s4  ;;  %v572_v35 = vsub.f32 %v570_v28, %v571_v32 }
  0x26   : > { %526 = vmatpush.msra.mxu3 %v1240_v2  ;;  %v226_v25 = vand.u32 4294901760, %v225_v24  ;;  %505 = vmatpush.msra.mxu2 %v1261_v7 }
  0x27   : > { %474 = vmatpush.msra.mxu1 %v1240_v2  ;;  %v573_v38 = vand.u32 4294901760, %v572_v35 }
  0x28   : > { %528 = vmatpush.msra.mxu3 %v1242_v3  ;;  %227 = vmatmul.f32.vlgmr.msra.gmra.mxu0 %v226_v25 }
  0x29   : > { %476 = vmatpush.msra.mxu1 %v1242_v3  ;;  %449 = vmatpush.msra.mxu0 %v1247_v4 }
  0x2a   : > { %359 = vmatmul.f32.vlgmr.msrb.gmra.mxu1 %v222_v20 }
  0x2b   : > { %597 = vmatpush.msrb.mxu1 %v1271_v16  ;;  %452 = vmatpush.msra.mxu0 %v1250_v5 }
  0x2d   : > { %603 = vmatpush.msrb.mxu1 %v1273_v17 }
  0x30   : > { %336 = vmatmul.f32.vlgmr.msrb.gmra.mxu0 %v222_v20 }
  0x31   : > { %566 = vmatpush.msrb.mxu0 %v1240_v2 }
  0x33   : > { %568 = vmatpush.msrb.mxu0 %v1242_v3 }
  0x8f   : > { %v372_v29 = vpop.permute.xlu0 %371 }
  0x90   : > { %v373_v30 = vsel %vm200_vm0, %v372_v29, 0 }
  0x91   : > { %v393_v31 = vand.u32 4294901760, %v373_v30 }
  0x93   : > { %v394_v33 = vsub.f32 %v373_v30, %v393_v31  ;;  %429 = vmatmul.f32.vlgmr.msrb.gmra.mxu3 %v393_v31 }
  0x94   : > { %650 = vmatpush.msrb.mxu3 %v1240_v2 }
  0x95   : > { %v395_v34 = vand.u32 4294901760, %v394_v33  ;;  %455 = vmatmul.f32.vlgmr.msra.gmra.mxu0 %v394_v33 }
  0x96   : > { %652 = vmatpush.msrb.mxu3 %v1242_v3  ;;  %677 = vmatpush.msra.mxu0 %v1258_v6 }
  0x97   : > { %480 = vmatmul.f32.vlgmr.msra.gmra.mxu1 %v395_v34  ;;  %v396_v36 = vsub.f32 %v394_v33, %v395_v34  ;;  %v719_v39 = vpop.permute.xlu0 %718 }
  0x98   : > { %681 = vmatpush.msra.mxu0 %v1261_v7  ;;  %702 = vmatpush.msra.mxu1 %v1240_v2  ;;  %v720_v40 = vsel %vm200_vm0, %v719_v39, 0 }
  0x99   : > { %v397_v37 = vand.u32 4294901760, %v396_v36  ;;  %v740_v41 = vand.u32 4294901760, %v720_v40 }
  0x9a   : > { %704 = vmatpush.msra.mxu1 %v1242_v3 }
  0x9b   : > { %398 = vmatmul.f32.vlgmr.msrb.gmra.mxu2 %v397_v37  ;;  %530 = vmatmul.f32.vlgmr.msra.gmra.mxu3 %v393_v31  ;;  %v741_v42 = vsub.f32 %v720_v40, %v740_v41 }
  0x9c   : > { %625 = vmatpush.msrb.mxu2 %v1247_v4  ;;  %768 = vmatpush.msra.mxu3 %v1271_v16 }
  0x9d   : > { %574 = vmatmul.f32.vlgmr.msrb.gmra.mxu0 %v573_v38  ;;  %v742_v43 = vand.u32 4294901760, %v741_v42 }
  0x9e   : > { %628 = vmatpush.msrb.mxu2 %v1250_v5  ;;  %774 = vmatpush.msra.mxu3 %v1273_v17 }
  0x9f   : > { %605 = vmatmul.f32.vlgmr.msrb.gmra.mxu1 %v569_v27  ;;  %796 = vmatpush.msrb.mxu0 %v1247_v4  ;;  %v743_v44 = vsub.f32 %v741_v42, %v742_v43  ;;  %v259_v47 = vpop.f32.mrf.mxu1 }
  0xa0   : > { %821 = vmatpush.msrb.mxu1 %v1240_v2 }
  0xa1   : > { %799 = vmatpush.msrb.mxu0 %v1250_v5  ;;  %v744_v45 = vand.u32 4294901760, %v743_v44 }
  0xa2   : > { %823 = vmatpush.msrb.mxu1 %v1242_v3 }
  0xa3   : > { %507 = vmatmul.f32.vlgmr.msra.gmra.mxu2 %v393_v31  ;;  %656 = vmatmul.f32.vlgmr.msrb.gmra.mxu3 %v571_v32 }
  0xa4   : > { %737 = vmatpush.msra.mxu2 %v1240_v2  ;;  %873 = vmatpush.msrb.mxu3 %v1240_v2 }
  0xa5   : > { %683 = vmatmul.f32.vlgmr.msra.gmra.mxu0 %v569_v27  ;;  %v228_v46 = vpop.f32.mrf.mxu0  ;;  %v285_v49 = vpop.f32.mrf.mxu2 }
  0xa6   : > { %739 = vmatpush.msra.mxu2 %v1242_v3  ;;  %875 = vmatpush.msrb.mxu3 %v1242_v3  ;;  %v260_v48 = vadd.f32 %v259_v47, %v228_v46 }
  0xa7   : > { %706 = vmatmul.f32.vlgmr.msra.gmra.mxu1 %v569_v27  ;;  %v310_v51 = vpop.f32.mrf.mxu3  ;;  %v360_v55 = vpop.f32.mrf.mxu1 }
  0xa8   : > { %v286_v50 = vadd.f32 %v285_v49, %v260_v48 }
  0xaa   : > { %v311_v52 = vadd.f32 %v310_v51, %v286_v50 }
  0xab   : > { %631 = vmatmul.f32.vlgmr.msrb.gmra.mxu2 %v570_v28  ;;  %776 = vmatmul.f32.vlgmr.msra.gmra.mxu3 %v740_v41 }
  0xac   : > { %848 = vmatpush.msrb.mxu2 %v1258_v6 }
  0xad   : > { %802 = vmatmul.f32.vlgmr.msrb.gmra.mxu0 %v741_v42  ;;  %v337_v53 = vpop.f32.mrf.mxu0 }
  0xae   : > { %852 = vmatpush.msrb.mxu2 %v1261_v7  ;;  %v338_v54 = vadd.f32 %v337_v53, %v311_v52 }
  0xaf   : > { %827 = vmatmul.f32.vlgmr.msrb.gmra.mxu1 %v742_v43 }
  0xb0   : > { %v361_v56 = vadd.f32 %v360_v55, %v338_v54 }
  0xb2   : > { %366 = vrot.lane.b32.xlu1 %v361_v56, %s1160_s7  ;;  %364 = vst.msk [vmem:[%s1324_s8] sm:$0xff] %vm363_vm1, %v361_v56 }
  0xb3   : > { %745 = vmatmul.f32.vlgmr.msra.gmra.mxu2 %v744_v45  ;;  %877 = vmatmul.f32.vlgmr.msrb.gmra.mxu3 %v740_v41 }
  0xbb   : > { %854 = vmatmul.f32.vlgmr.msrb.gmra.mxu2 %v740_v41 }
 0x112   : > { %v456_v58 = vpop.f32.mrf.mxu0 }
 0x114   : > { %v481_v59 = vpop.f32.mrf.mxu1 }
 0x116   : > { %v430_v57 = vpop.f32.mrf.mxu3 }
 0x11a   : > { %v575_v0 = vpop.f32.mrf.mxu0 }
 0x11c   : > { %v606_v4 = vpop.f32.mrf.mxu1 }
 0x11d   : > { %v607_v7 = vadd.f32 %v606_v4, %v575_v0 }
 0x11e   : > { %v399_v60 = vpop.f32.mrf.mxu2  ;;  %v531_v63 = vpop.f32.mrf.mxu3 }
 0x11f   : > { %v431_v61 = vadd.f32 %v430_v57, %v399_v60 }
 0x121   : > { %v457_v62 = vadd.f32 %v456_v58, %v431_v61 }
 0x122   : > { %v684_v8 = vpop.f32.mrf.mxu0 }
 0x123   : > { %v482_v1 = vadd.f32 %v481_v59, %v457_v62 }
 0x124   : > { %v707_v12 = vpop.f32.mrf.mxu1  ;;  %v367_v26 = vpop.permute.xlu1 %366 }
 0x125   : > { %1004 = vst.msk [vmem:[%s1324_s8 + $0x8] sm:$0xff] %vm363_vm1, %v367_v26 }
 0x126   : > { %v508_v2 = vpop.f32.mrf.mxu2  ;;  %v657_v6 = vpop.f32.mrf.mxu3 }
 0x127   : > { %v509_v3 = vadd.f32 %v508_v2, %v482_v1 }
 0x129   : > { %v532_v5 = vadd.f32 %v531_v63, %v509_v3 }
 0x12a   : > { %v803_v18 = vpop.f32.mrf.mxu0 }
 0x12b   : > { %1005 = vst.msk [vmem:[%s1324_s8 + $0x10] sm:$0xff] %vm363_vm1, %v532_v5  ;;  %537 = vrot.lane.b32.xlu1 %v532_v5, %s1160_s7 }
 0x12c   : > { %v828_v20 = vpop.f32.mrf.mxu1 }
 0x12e   : > { %v632_v9 = vpop.f32.mrf.mxu2  ;;  %v777_v15 = vpop.f32.mrf.mxu3 }
 0x12f   : > { %v633_v10 = vadd.f32 %v632_v9, %v607_v7 }
 0x131   : > { %v658_v11 = vadd.f32 %v657_v6, %v633_v10 }
 0x133   : > { %v685_v13 = vadd.f32 %v684_v8, %v658_v11 }
 0x135   : > { %v708_v14 = vadd.f32 %v707_v12, %v685_v13 }
 0x136   : > { %v746_v16 = vpop.f32.mrf.mxu2  ;;  %v878_v24 = vpop.f32.mrf.mxu3 }
 0x137   : > { %v778_v17 = vadd.f32 %v777_v15, %v746_v16  ;;  %713 = vrot.lane.b32.xlu2 %v708_v14, %s1160_s7  ;;  %1009 = vst.msk [vmem:[%s1324_s8 + $0x20] sm:$0xff] %vm363_vm1, %v708_v14 }
 0x139   : > { %v804_v19 = vadd.f32 %v803_v18, %v778_v17 }
 0x13b   : > { %v829_v21 = vadd.f32 %v828_v20, %v804_v19 }
 0x13e   : > { %v855_v22 = vpop.f32.mrf.mxu2 }
 0x13f   : > { %v856_v23 = vadd.f32 %v855_v22, %v829_v21 }
 0x141   : > { %v879_v25 = vadd.f32 %v878_v24, %v856_v23 }
 0x143   : > { %1011 = vst.msk [vmem:[%s1324_s8 + $0x30] sm:$0xff] %vm363_vm1, %v879_v25  ;;  %884 = vrot.lane.b32.xlu2 %v879_v25, %s1160_s7 }
 0x191   : > { %v714_v27 = vpop.permute.xlu2 %713 }
 0x192   : > { %1010 = vst.msk [vmem:[%s1324_s8 + $0x28] sm:$0xff] %vm363_vm1, %v714_v27 }
 0x19d   : > { %v885_v28 = vpop.permute.xlu2 %884  ;;  %v538_v29 = vpop.permute.xlu1 %537 }
 0x19e   : > { %1012 = vst.msk [vmem:[%s1324_s8 + $0x38] sm:$0xff] %vm363_vm1, %v885_v28 }
 0x19f   : > { %1006 = vst.msk [vmem:[%s1324_s8 + $0x18] sm:$0xff] %vm363_vm1, %v538_v29 }
 0x1a0   : > { %1106 = shalt.err (!%p1103_p5)
}
 0x1a1   : > { %s1161_s4 = smov 128   ;;  %s1162_s5 = smov 8  }
 0x1a2   : > { %1020 = dma.vmem_to_hbm [thread:$0]  (%p1218_p4), %s907_s23, 1024, %s909_s24, %s890_s25, %s1161_s4, %s1161_s4, %s1162_s5  }
 0x1a3 PF: > { %p1026_p6 = scmp.ge.s32.totalorder %s1157_s14, 2  ;;  %s923_s6 = sand.u32 1, %s1137_s9  }
 0x1a4   : > { %s924_s7 = scalar_lea.sflag [#allocation3], %s923_s6 }
 0x1a5   : > { %p1023_p7 = pnand %p1026_p6, %p1225_p8 }
 0x1a7   : > { %p1024_p9 = pneg %p1023_p7 }
 0x1a9   : > { %1132 = dma.done.wait (%p1024_p9), %s924_s7, 1024  }
 0x1aa   : > { %1134 = vsyncadd (%p1024_p9), %s924_s7, 4294966272  ;;  %s15_s14 = sadd.s32 1, %s1157_s14   ;;  %s1389_s9 = smov %s1141_s10 }
 0x1ab   : > { %p12_p10 = scmp.ge.s32.totalorder %s15_s14, 4   ;;  %s1390_s10 = smov %s1145_s11 }
 0x1ac   : > { %s1391_s11 = smov %s1231_s22  ;;  %s1392_s12 = smov %s1153_s13 }
 0x1ad   : > { %s1393_s13 = smov %s1395_s17  ;;  %14 = sbr.rel (!%p12_p10) target bundleno = 4 (0x4), region = 73 }
 0x1b2   :  { %930 = vsyncpa [#allocation3], 1 }
 0x1b3   :  { %932 = vsyncpa [#allocation3 + $0x1], 1 }

</bundles_post_ra>
